<compile_context>
chip_gen: v7x
topology: tpu7x:2x2x1
jax: 0.10.0
libtpu: 0.0.40
codegen_flags: <defaults>
</compile_context>

<pallas_src>
import jax
import jax.numpy as jnp
from jax.experimental import pallas as pl
from jax.experimental.pallas import tpu as pltpu

_LANE = 128                     # vreg lane width
_SUBLANE = 8                    # f32 sublane count (BlockSpec divisibility rule)
_TARGET_BLOCK_BYTES = 4 << 20   # ~4 MiB blocks: >=85% of HBM roofline, low step overhead
_VMEM_LIMIT_BYTES = 48 << 20    # < 64 MiB physical on v7x, far below 128 MiB on v5e/v6e


def _drop_path_kernel(x_ref, scale_ref, o_ref):
    # x_ref: (tb, tile_n) activation tile; scale_ref: (tb, 1) f32 per-sample scale.
    o_ref[...] = (x_ref[...] * scale_ref[...]).astype(o_ref.dtype)


def _drop_path_add_kernel(x_ref, scale_ref, shortcut_ref, o_ref):
    # Fused residual: out = shortcut + scale * x  (saves one HBM round trip of
    # the DropPath intermediate in the common `x = shortcut + drop_path(y)`).
    o_ref[...] = (shortcut_ref[...] + x_ref[...] * scale_ref[...]).astype(o_ref.dtype)


def _choose_tiles(batch, n, itemsize, target_bytes):
    """Pick (tb, tile_n) block dims for a (batch, n) array.

    Block dims must be a multiple of (8, 128) on the last two axes OR span the
    full axis.  tile_n stays a multiple of 128 (unmasked lane-dense stores)
    except when it covers the whole (possibly ragged) row in one block, which
    Pallas handles with masked tail stores in a single HBM pass (no pad/slice).
    Block bytes never exceed `target_bytes`.
    """
    row_bytes = max(n * itemsize, 1)
    min_tb = batch if batch < _SUBLANE else _SUBLANE

    if min_tb * row_bytes >= target_bytes:
        # Per-sample slabs are big enough: take the minimal legal tb and tile
        # along n to hit the byte target.
        tb = min_tb
        tile_n = (target_bytes // (tb * itemsize)) // _LANE * _LANE
        tile_n = max(_LANE, tile_n)
        if tile_n >= n:
            tile_n = n
    else:
        # Small per-sample slabs: take full rows and block across contiguous
        # samples so the 0.35 us per-grid-step overhead stays amortized.
        tile_n = n
        want_tb = max(1, target_bytes // row_bytes)
        if batch <= _SUBLANE or want_tb >= batch:
            tb = batch
        else:
            tb = max(_SUBLANE, (want_tb // _SUBLANE) * _SUBLANE)

    # v7x has two TensorCores: make sure a non-trivial problem yields >= 2
    # parallel grid steps so neither core sits idle.
    if (batch * n * itemsize > (2 << 20)
            and pl.cdiv(batch, tb) * pl.cdiv(n, tile_n) < 2):
        if n >= 2 * _LANE:
            tile_n = pl.cdiv(pl.cdiv(n, 2), _LANE) * _LANE
        elif batch > 2 * _SUBLANE:
            tb = pl.cdiv(pl.cdiv(batch, 2), _SUBLANE) * _SUBLANE
    return tb, tile_n


def _scaled_copy(x, scale, shortcut=None, *, donate_x=False,
                 target_block_bytes=_TARGET_BLOCK_BYTES):
    """out = (shortcut +) scale[b] * x over a lane-dense (B, N) view of x."""
    batch = x.shape[0]
    n = 1
    for d in x.shape[1:]:
        n *= d
    n = max(n, 1)

    x2 = x.reshape(batch, n)                         # free row-major reshape
    scale2 = scale.reshape(batch, 1).astype(jnp.float32)

    itemsize = jnp.dtype(x.dtype).itemsize
    tb, tile_n = _choose_tiles(batch, n, itemsize, target_block_bytes)
    grid = (pl.cdiv(batch, tb), pl.cdiv(n, tile_n))  # n-tiles iterate fastest -> contiguous DMA

    data_spec = pl.BlockSpec((tb, tile_n), lambda b, t: (b, t))
    scale_spec = pl.BlockSpec((tb, 1), lambda b, t: (b, 0))

    operands = [x2, scale2]
    in_specs = [data_spec, scale_spec]
    kernel = _drop_path_kernel
    if shortcut is not None:
        operands.append(shortcut.reshape(batch, n))
        in_specs.append(data_spec)
        kernel = _drop_path_add_kernel

    out2 = pl.pallas_call(
        kernel,
        out_shape=jax.ShapeDtypeStruct((batch, n), x.dtype),
        grid=grid,
        in_specs=in_specs,
        out_specs=data_spec,
        compiler_params=pltpu.CompilerParams(
            dimension_semantics=("parallel", "parallel"),
            vmem_limit_bytes=_VMEM_LIMIT_BYTES,
        ),
        # Reuse x's HBM buffer for the output when the caller donates x.
        input_output_aliases={0: 0} if donate_x else {},
    )(*operands)
    return out2.reshape(x.shape)


def _per_sample_scale(batch, keep_prob, key):
    # Same recipe as torch: floor(keep_prob + U[0,1)) in {0, 1}; fold 1/keep_prob
    # in so the kernel body is a single broadcast multiply.
    u = jax.random.uniform(key, (batch,), dtype=jnp.float32)
    return jnp.floor(keep_prob + u) / keep_prob


def drop_path(x, drop_prob, key, *, training=True, donate_x=False,
              target_block_bytes=_TARGET_BLOCK_BYTES):
    """JAX/Pallas equivalent of SwinTransformer.DropPath.forward.

    `drop_prob` and `training` are static Python values (as in the PyTorch
    module); do not pass traced arrays for them.  Set `donate_x=True` only if
    the caller no longer needs x (buffer aliasing).
    """
    if drop_prob == 0.0 or not training:
        return x
    scale = _per_sample_scale(x.shape[0], 1.0 - drop_prob, key)
    return _scaled_copy(x, scale, donate_x=donate_x,
                        target_block_bytes=target_block_bytes)


def drop_path_residual(shortcut, x, drop_prob, key, *, training=True,
                       target_block_bytes=_TARGET_BLOCK_BYTES):
    """Fused `shortcut + drop_path(x)` — the way Swin blocks consume DropPath."""
    if drop_prob == 0.0 or not training:
        return shortcut + x
    scale = _per_sample_scale(x.shape[0], 1.0 - drop_prob, key)
    return _scaled_copy(x, scale, shortcut=shortcut,
                        target_block_bytes=target_block_bytes)


if __name__ == "__main__":
    key = jax.random.PRNGKey(0)
    kx, kmask = jax.random.split(key)
    drop_prob = 0.25
    keep_prob = 1.0 - drop_prob

    def ref_drop_path(xa, k):
        # Pure-JAX reference, identical math to the PyTorch forward.
        u = jax.random.uniform(k, (xa.shape[0],), dtype=jnp.float32)
        mask = jnp.floor(keep_prob + u).reshape((xa.shape[0],) + (1,) * (xa.ndim - 1))
        return (xa.astype(jnp.float32) / keep_prob * mask).astype(xa.dtype)

    # 1) Main NCHW case (Swin-style activations).
    x = jax.random.normal(kx, (2, 4, 16, 16), dtype=jnp.float32)
    out = jax.block_until_ready(drop_path(x, drop_prob, kmask, training=True))
    assert out.shape == x.shape and out.dtype == x.dtype
    assert jnp.allclose(out, ref_drop_path(x, kmask), atol=1e-5, rtol=1e-5)

    # 2) Ragged lane tail: N % 128 != 0, single pass, no pad/slice.
    x_odd = jax.random.normal(jax.random.fold_in(kx, 1), (3, 5, 7, 9), dtype=jnp.float32)
    k_odd = jax.random.fold_in(kmask, 1)
    out_odd = jax.block_until_ready(drop_path(x_odd, drop_prob, k_odd, training=True))
    assert jnp.allclose(out_odd, ref_drop_path(x_odd, k_odd), atol=1e-5, rtol=1e-5)

    # 3) bf16, cross-sample blocking with ragged sample/row tiles (small block target).
    x_b = jax.random.normal(jax.random.fold_in(kx, 2), (20, 8, 8, 16), dtype=jnp.bfloat16)
    k_b = jax.random.fold_in(kmask, 2)
    out_b = jax.block_until_ready(
        drop_path(x_b, drop_prob, k_b, training=True, target_block_bytes=8 * 1024))
    assert out_b.dtype == jnp.bfloat16
    assert jnp.allclose(out_b.astype(jnp.float32),
                        ref_drop_path(x_b, k_b).astype(jnp.float32),
                        atol=1e-2, rtol=1e-2)

    # 4) Intra-sample tiling (multiple n-tiles) + donated-input aliasing.
    x_d = jax.random.normal(jax.random.fold_in(kx, 3), (2, 4, 32, 32), dtype=jnp.float32)
    k_d = jax.random.fold_in(kmask, 3)
    ref_d = ref_drop_path(x_d, k_d)          # computed before x_d is donated
    out_d = jax.block_until_ready(
        drop_path(x_d, drop_prob, k_d, training=True, donate_x=True,
                  target_block_bytes=8 * 1024))
    assert jnp.allclose(out_d, ref_d, atol=1e-5, rtol=1e-5)

    # 5) Fused residual variant: shortcut + drop_path(x).
    shortcut = jax.random.normal(jax.random.fold_in(kx, 4), (2, 4, 32, 32), dtype=jnp.float32)
    x_r = jax.random.normal(jax.random.fold_in(kx, 5), (2, 4, 32, 32), dtype=jnp.float32)
    k_r = jax.random.fold_in(kmask, 4)
    out_r = jax.block_until_ready(
        drop_path_residual(shortcut, x_r, drop_prob, k_r, training=True,
                           target_block_bytes=8 * 1024))
    assert jnp.allclose(out_r, shortcut + ref_drop_path(x_r, k_r), atol=1e-5, rtol=1e-5)
    assert jnp.array_equal(
        drop_path_residual(shortcut, x_r, 0.0, k_r, training=True), shortcut + x_r)

    # 6) Identity short-circuits, exactly as in PyTorch.
    assert jnp.array_equal(drop_path(x, 0.0, kmask, training=True), x)
    assert jnp.array_equal(drop_path(x, drop_prob, kmask, training=False), x)

    print("KERNEL_OK")
</pallas_src>

<mosaic_0001>
module attributes {stable_mosaic.version = 11 : i64} {
  func.func @_drop_path_kernel(%arg0: i32, %arg1: i32, %arg2: memref<2x1024xf32, #tpu.memory_space<vmem>>, %arg3: memref<2x1xf32, #tpu.memory_space<vmem>>, %arg4: memref<2x1024xf32, #tpu.memory_space<vmem>>) attributes {dimension_semantics = [#tpu.dimension_semantics<parallel>, #tpu.dimension_semantics<parallel>], iteration_bounds = array<i64: 1, 1>, scalar_prefetch = 0 : i64, scratch_operands = 0 : i64, tpu.core_type = #tpu.core_type<tc>, window_params = [{transform_indices = @transform_0, window_bounds = array<i64: 2, 1024>}, {transform_indices = @transform_1, window_bounds = array<i64: 2, 1>}, {transform_indices = @transform_2, window_bounds = array<i64: 2, 1024>}]} {
    %c0 = arith.constant 0 : index
    %c0_0 = arith.constant 0 : index
    %0 = vector.load %arg2[%c0, %c0_0] : memref<2x1024xf32, #tpu.memory_space<vmem>>, vector<2x1024xf32>
    %c0_1 = arith.constant 0 : index
    %c0_2 = arith.constant 0 : index
    %1 = vector.load %arg3[%c0_1, %c0_2] : memref<2x1xf32, #tpu.memory_space<vmem>>, vector<2x1xf32>
    %2 = vector.broadcast %1 : vector<2x1xf32> to vector<2x1024xf32>
    %3 = arith.mulf %0, %2 : vector<2x1024xf32>
    %c0_3 = arith.constant 0 : index
    %c0_4 = arith.constant 0 : index
    %4 = vector.load %arg4[%c0_3, %c0_4] : memref<2x1024xf32, #tpu.memory_space<vmem>>, vector<2x1024xf32>
    tpu.vector_store %arg4[%c0_3, %c0_4], %3 {strides = array<i32>} : memref<2x1024xf32, #tpu.memory_space<vmem>>, vector<2x1024xf32>,
    return
  }
  func.func @transform_0(%arg0: i32, %arg1: i32) -> (i32, i32) {
    %c0_i32 = arith.constant 0 : i32
    return %arg0, %arg1 : i32, i32
  }
  func.func @transform_1(%arg0: i32, %arg1: i32) -> (i32, i32) {
    %c0_i32 = arith.constant 0 : i32
    %c0_i32_0 = arith.constant 0 : i32
    return %arg0, %c0_i32 : i32, i32
  }
  func.func @transform_2(%arg0: i32, %arg1: i32) -> (i32, i32) {
    %c0_i32 = arith.constant 0 : i32
    return %arg0, %arg1 : i32, i32
  }
}

</mosaic_0001>

<bundles_post_ra>
// kernel: tpu_custom_call.1
= control target key start
LH: loop header
LB: loop body
LE: loop exit
PB: predicated region body
PF: predicated region fallthrough
CT: control target
= control target key end

     0   :  { %7 = vsyncpa [#allocation3], 0  ;;  %s157_s0 = inlined_call_operand.hbm [shape: f32[2,1024], index: 0, kind: input, shape index: {}]   ;;  %s158_s1 = inlined_call_operand.vmem [shape: f32[2,1], index: 1, kind: input, shape index: {}]   ;;  %s159_s2 = inlined_call_operand.hbm [shape: f32[2,1024], index: 2, kind: output, shape index: {}]  }
   0x1   :  { %8 = vsyncpa [#allocation4], 0  ;;  %s111_s9 = smov [#allocation2]   ;;  %s63_s13 = scalar_lea.hbm %s157_s0, 256 }
   0x2   :  { %s15_s10 = sshll.u32 %s111_s9, 4  ;;  %p64_p0 = scmp.ne.s32.totalorder %s157_s0, %s63_s13  ;;  %s16_s10 = int_to_ptr.vmem [resolvable:$true] %s15_s10 }
   0x3   :  { %p67_p1 = scmp.lt.u32.totalorder %s63_s13, %s157_s0 }
   0x5   :  { %p69_p2 = pnand %p67_p1, %p64_p0 }
   0x7   :  { %72 = shalt.err (!%p69_p2)
}
   0x8   :  { %s73_s18 = scalar_lea.vmem %s16_s10, 256  ;;  %p78_p4 = scmp.lt.s32.totalorder %s16_s10, %s16_s10 }
   0x9   :  { %p74_p3 = scmp.ne.s32.totalorder %s16_s10, %s73_s18  ;;  %p79_p5 = scmp.lt.s32.totalorder %s73_s18, %s73_s18 }
   0xb   :  { %p80_p6 = por %p79_p5, %p78_p4 }
   0xd   :  { %p81_p7 = pnand %p80_p6, %p74_p3 }
   0xf   :  { %84 = shalt.err (!%p81_p7)
}
  0x10   :  { %18 = dma.hbm_to_vmem [thread:$0]  %s157_s0, 256, %s16_s10, [#allocation3]  }
  0x11   :  { %107 = dma.done.wait [#allocation3], 256  }
  0x12   :  { %108 = vsyncadd [#allocation3], 4294967040  ;;  %v112_v0 = vmov 0   ;;  %v26_v1 = vld [vmem:[%s158_s1] sm:$0x3]  ;;  %v34_v4 = vlaneseq  ;;  %v25_v10 = vld [vmem:[#allocation2 + $0x8] sm:$0xff] }
  0x13   :  { %62 = vset.pattern.permute.xlu0 %v112_v0  ;;  %v113_v2 = vmov 269488144   ;;  %v24_v9 = vld [vmem:[#allocation2] sm:$0xff]  ;;  %s114_s23 = smov [#allocation5]  }
  0x14   :  { %29 = vperm.xlu0 %62, %v26_v1   ;;  %v32_v3 = vunpack.c.l.s4 %v113_v2  ;;  %v35_v6 = vshrl.u32 %v34_v4, 7  ;;  %s49_s0 = sshll.u32 %s114_s23, 4  ;;  %s50_s0 = int_to_ptr.vmem [resolvable:$true] %s49_s0 }
  0x15   :  { %s85_s24 = scalar_lea.vmem %s50_s0, 256  ;;  %p90_p9 = scmp.lt.s32.totalorder %s50_s0, %s50_s0 }
  0x16   :  { %v33_v5 = vunpack.c.0.s8 %v32_v3  ;;  %p86_p8 = scmp.ne.s32.totalorder %s50_s0, %s85_s24  ;;  %p91_p10 = scmp.lt.s32.totalorder %s85_s24, %s85_s24 }
  0x18   :  { %v36_v7 = vsub.s32 %v33_v5, %v35_v6  ;;  %p92_p11 = por %p91_p10, %p90_p9 }
  0x1a   :  { %p93_p12 = pnand %p92_p11, %p86_p8 }
  0x93   :  { %v30_v8 = vpop.permute.xlu0 %29 }
  0x94   :  { %v37_v11 = vrot.slane %v30_v8, %v36_v7 }
  0x96   :  { %v39_v12 = vmul.f32 %v37_v11, %v24_v9  ;;  %v40_v13 = vmul.f32 %v37_v11, %v25_v10 }
  0x98   :  { %41 = vst [vmem:[#allocation5] sm:$0xff] %v39_v12  ;;  %42 = vst [vmem:[#allocation5 + $0x8] sm:$0xff] %v40_v13 }
  0x99   :  { %96 = shalt.err (!%p93_p12)
}
  0x9a   :  { %s97_s26 = scalar_lea.hbm %s159_s2, 256 }
  0x9b   :  { %p98_p13 = scmp.ne.s32.totalorder %s159_s2, %s97_s26  ;;  %p101_p0 = scmp.lt.u32.totalorder %s97_s26, %s159_s2 }
  0x9d   :  { %p103_p1 = pnand %p101_p0, %p98_p13 }
  0x9f   :  { %106 = shalt.err (!%p103_p1)
}
  0xa0   :  { %52 = dma.vmem_to_hbm [thread:$0]  %s50_s0, 256, %s159_s2, [#allocation4]  }
  0xa1   :  { %109 = dma.done.wait [#allocation4], 256  }
  0xa2   :  { %110 = vsyncadd [#allocation4], 4294967040 }
  0xa3   :  { %56 = vsyncpa [#allocation3], 1 }
  0xa4   :  { %57 = vsyncpa [#allocation4], 1 }

</bundles_post_ra>
